<compile_context>
chip_gen: v5e
topology: v5e:2x2
jax: 0.10.0
libtpu: 0.0.40
codegen_flags: <defaults>
</compile_context>

<pallas_src>
import functools

import numpy as np
import jax
import jax.numpy as jnp
from jax.experimental import pallas as pl
from jax.experimental.pallas import tpu as pltpu


def _fused_mix_kernel(x_ref, w_ref, b_ref, aw_ref, ab_ref, o_ref,
                      ws_ref, bs_ref, *, inv_s, s_tile):
    """Fused attention-scale + 1x1 conv, streaming the output over S tiles.

    x_ref : (1, Cin, S_pad) VMEM  per-batch resident input slab
    w_ref : (Ctot, Cin)     VMEM  resident conv weight (transposed)
    b_ref : (Ctot, 1)       VMEM  resident conv bias
    aw_ref: (Ctot, Cin)     VMEM  resident folded attention weight
    ab_ref: (Ctot, 1)       VMEM  resident folded attention bias
    o_ref : (1, Ctot, tS)   VMEM  output tile (lane-dense)
    ws_ref: (Ctot, Cin)     VMEM scratch: per-batch attention-scaled weight
    bs_ref: (Ctot, 1)       VMEM scratch: per-batch attention-scaled bias
    """
    s = pl.program_id(1)

    @pl.when(s == 0)
    def _per_batch_scale():
        # GAP over true S (zero-padded columns contribute 0 to the sum).
        xsum = jnp.sum(x_ref[0], axis=1, keepdims=True)              # (Cin, 1)
        logits = (jnp.dot(aw_ref[...], xsum,
                          preferred_element_type=jnp.float32) * inv_s
                  + ab_ref[...])                                      # (Ctot, 1)
        scale = jax.nn.sigmoid(logits)
        # Fold the per-channel attention scale into weight + bias so the
        # per-element epilogue is just one add.
        ws_ref[...] = w_ref[...] * scale
        bs_ref[...] = b_ref[...] * scale

    start = pl.multiple_of(s * s_tile, 128)
    x_tile = x_ref[0, :, pl.ds(start, s_tile)]                        # (Cin, tS)
    y = jnp.dot(ws_ref[...], x_tile, preferred_element_type=jnp.float32)
    o_ref[0] = (y + bs_ref[...]).astype(o_ref.dtype)


def _vmem_budget_bytes():
    """Generation-aware (budget_for_tiles, vmem_limit) in bytes."""
    try:
        cap = int(pltpu.get_tpu_info().vmem_capacity_bytes)
    except Exception:
        cap = 64 << 20                      # conservative: assume v7x-sized VMEM
    budget = min(cap // 2, 48 << 20)        # ~32 MiB on v7x, 48 MiB on v5e/v6e
    limit = min(cap * 3 // 4, budget + (16 << 20))
    return budget, limit


def _pick_s_tile(s_pad, batch, cin, ctot, budget_bytes):
    """Largest 128-multiple divisor of s_pad that (a) keeps double-buffered
    tiles + the resident x slab within the VMEM budget and (b) leaves >= ~8
    total grid steps so BlockSpec double-buffering can hide prologue/epilogue
    DMA even at small batch."""
    pad8 = lambda c: -(-c // 8) * 8
    pad128 = lambda c: -(-c // 128) * 128
    # tS-independent VMEM: resident x slab (2 bufs) + small weight/scratch arrays.
    fixed = (2 * pad8(cin) * s_pad * 4
             + 10 * pad8(ctot) * pad128(cin) * 4)
    per_col = 2 * pad8(ctot) * 4            # double-buffered output tile, per lane col
    avail = max(budget_bytes - fixed, per_col * 128)
    vmem_cap = max(128, (avail // per_col) // 128 * 128)
    target_steps = 8
    step_cap = max(128, (s_pad * batch // target_steps) // 128 * 128)
    cap = min(s_pad, vmem_cap, step_cap)
    best = 128
    for t in range(128, cap + 1, 128):
        if s_pad % t == 0:
            best = t
    return best


def mixed_feature_extractor(x_nchw, w_conv, b_conv, w_att, b_att, seg_chans,
                            s_tile=None):
    """x_nchw: (B, Cin, H, W) f32 -> (B, Ctot, H, W) f32 (attention=True path)."""
    B, Cin, H, W = x_nchw.shape
    S = H * W
    Ctot = int(sum(seg_chans))
    num_ext = len(seg_chans)
    assert w_conv.shape == (Cin, Ctot)
    assert b_conv.shape == (1, Ctot)
    assert w_att.shape == (1, Ctot)
    assert b_att.shape == (num_ext,)

    # Free reshape: NCHW is already channel-major (B, C, S).
    x = x_nchw.reshape(B, Cin, S)

    # Pad S to a multiple of 128 (lane-dense loads, unmasked stores). Zero
    # columns do not perturb the GAP because inv_s uses the true S.
    S_pad = -(-S // 128) * 128
    if S_pad != S:
        x = jnp.pad(x, ((0, 0), (0, 0), (0, S_pad - S)))

    # ---- host-side parameter folding (tiny, weight-sized math) -------------
    seg_ids = np.repeat(np.arange(num_ext), seg_chans)                 # (Ctot,)
    w_t = jnp.transpose(w_conv)                                        # (Ctot, Cin)
    b_col = b_conv.reshape(Ctot, 1)                                    # (Ctot, 1)
    wa = w_att[0]                                                      # (Ctot,)
    onehot = jnp.asarray(seg_ids[None, :] == np.arange(num_ext)[:, None],
                         dtype=jnp.float32)                            # (nE, Ctot)
    a_seg = onehot @ (wa[:, None] * w_t)                               # (nE, Cin)
    b_seg = onehot @ (wa * b_conv[0]) + b_att                          # (nE,)
    aw_full = a_seg[seg_ids]                                           # (Ctot, Cin)
    ab_full = b_seg[seg_ids][:, None]                                  # (Ctot, 1)

    # ---- tiling (generation- and pipeline-aware) ----------------------------
    budget, vmem_limit = _vmem_budget_bytes()
    tS = s_tile if s_tile is not None else _pick_s_tile(S_pad, B, Cin, Ctot, budget)
    assert S_pad % tS == 0 and tS % 128 == 0, (S_pad, tS)
    nS = S_pad // tS

    out = pl.pallas_call(
        functools.partial(_fused_mix_kernel, inv_s=1.0 / S, s_tile=tS),
        out_shape=jax.ShapeDtypeStruct((B, Ctot, S_pad), jnp.float32),
        grid=(B, nS),
        in_specs=[
            pl.BlockSpec((1, Cin, S_pad), lambda b, s: (b, 0, 0)),  # resident slab
            pl.BlockSpec((Ctot, Cin), lambda b, s: (0, 0)),
            pl.BlockSpec((Ctot, 1), lambda b, s: (0, 0)),
            pl.BlockSpec((Ctot, Cin), lambda b, s: (0, 0)),
            pl.BlockSpec((Ctot, 1), lambda b, s: (0, 0)),
        ],
        out_specs=pl.BlockSpec((1, Ctot, tS), lambda b, s: (b, 0, s)),
        scratch_shapes=[pltpu.VMEM((Ctot, Cin), jnp.float32),
                        pltpu.VMEM((Ctot, 1), jnp.float32)],
        compiler_params=pltpu.CompilerParams(
            dimension_semantics=("parallel", "arbitrary"),
            vmem_limit_bytes=vmem_limit),
    )(x, w_t, b_col, aw_full, ab_full)

    if S_pad != S:
        out = out[:, :, :S]
    # Free reshape back to NCHW (matches torch.cat(dim=1) layout exactly).
    return out.reshape(B, Ctot, H, W)


def reference(x_nchw, w_conv, b_conv, w_att, b_att, seg_chans):
    """Pure-JAX reference mirroring the PyTorch forward (attention=True)."""
    y = jnp.einsum('bchw,cd->bdhw', x_nchw, w_conv,
                   precision=jax.lax.Precision.HIGHEST)
    y = y + b_conv.reshape(1, -1, 1, 1)
    outs = []
    c0 = 0
    for i, c in enumerate(seg_chans):
        seg = y[:, c0:c0 + c]                       # extractor_i(x)
        gap = jnp.mean(seg, axis=(2, 3))            # (B, c)
        att = jax.nn.sigmoid(gap @ w_att[0, c0:c0 + c] + b_att[i])  # (B,)
        outs.append(seg * att[:, None, None, None])
        c0 += c
    return jnp.concatenate(outs, axis=1)


if __name__ == "__main__":
    def check(B, Cin, H, W, seg_chans, s_tile=None):
        Ctot = int(sum(seg_chans))
        num_ext = len(seg_chans)
        key = jax.random.PRNGKey(0)
        kx, kw, kb, kaw, kab = jax.random.split(key, 5)
        x = jax.random.normal(kx, (B, Cin, H, W), dtype=jnp.float32)
        w_conv = 0.1 * jax.random.normal(kw, (Cin, Ctot), dtype=jnp.float32)
        b_conv = 0.1 * jax.random.normal(kb, (1, Ctot), dtype=jnp.float32)
        w_att = 0.1 * jax.random.normal(kaw, (1, Ctot), dtype=jnp.float32)
        b_att = 0.1 * jax.random.normal(kab, (num_ext,), dtype=jnp.float32)

        out = mixed_feature_extractor(x, w_conv, b_conv, w_att, b_att,
                                      seg_chans, s_tile=s_tile)
        out = jax.block_until_ready(out)
        ref = reference(x, w_conv, b_conv, w_att, b_att, seg_chans)
        assert out.shape == (B, Ctot, H, W), out.shape
        err = float(jnp.max(jnp.abs(out - ref)))
        assert jnp.allclose(out, ref, rtol=1e-3, atol=1e-3), err

    # Small shape consistent with the module: 2 extractors, same spatial size.
    check(2, 4, 16, 16, (8, 8))
    # Larger spatial with forced S-tiling: exercises multi-tile S, the per-batch
    # scale scratch reuse across tiles, and unequal extractor widths.
    check(2, 4, 32, 32, (8, 16, 8), s_tile=256)
    # Non-128-multiple spatial size: exercises the zero-pad + slice path.
    check(2, 4, 10, 10, (8, 8))

    print("KERNEL_OK")
</pallas_src>

<mosaic_0001>
module attributes {stable_mosaic.version = 11 : i64} {
  func.func @_fused_mix_kernel(%arg0: i32, %arg1: i32, %arg2: memref<1x4x256xf32, #tpu.memory_space<vmem>>, %arg3: memref<16x4xf32, #tpu.memory_space<vmem>>, %arg4: memref<16x1xf32, #tpu.memory_space<vmem>>, %arg5: memref<16x4xf32, #tpu.memory_space<vmem>>, %arg6: memref<16x1xf32, #tpu.memory_space<vmem>>, %arg7: memref<1x16x128xf32, #tpu.memory_space<vmem>>, %arg8: memref<16x4xf32, #tpu.memory_space<vmem>>, %arg9: memref<16x1xf32, #tpu.memory_space<vmem>>) attributes {dimension_semantics = [#tpu.dimension_semantics<parallel>, #tpu.dimension_semantics<arbitrary>], iteration_bounds = array<i64: 2, 2>, scalar_prefetch = 0 : i64, scratch_operands = 2 : i64, tpu.core_type = #tpu.core_type<tc>, window_params = [{transform_indices = @transform_0, window_bounds = array<i64: 1, 4, 256>}, {pipeline_mode = #tpu.pipeline_mode<synchronous>, transform_indices = @transform_1, window_bounds = array<i64: 16, 4>}, {pipeline_mode = #tpu.pipeline_mode<synchronous>, transform_indices = @transform_2, window_bounds = array<i64: 16, 1>}, {pipeline_mode = #tpu.pipeline_mode<synchronous>, transform_indices = @transform_3, window_bounds = array<i64: 16, 4>}, {pipeline_mode = #tpu.pipeline_mode<synchronous>, transform_indices = @transform_4, window_bounds = array<i64: 16, 1>}, {transform_indices = @transform_5, window_bounds = array<i64: 1, 16, 128>}]} {
    %c0_i32 = arith.constant 0 : i32
    %0 = arith.cmpi eq, %arg1, %c0_i32 : i32
    %1 = arith.extui %0 : i1 to i32
    %c0_i32_0 = arith.constant 0 : i32
    %2 = arith.cmpi ne, %1, %c0_i32_0 : i32
    scf.if %2 {
      %c0_9 = arith.constant 0 : index
      %c0_10 = arith.constant 0 : index
      %c0_11 = arith.constant 0 : index
      %16 = vector.load %arg2[%c0_9, %c0_10, %c0_11] : memref<1x4x256xf32, #tpu.memory_space<vmem>>, vector<1x4x256xf32>
      %17 = vector.shape_cast %16 : vector<1x4x256xf32> to vector<4x256xf32>
      %cst_12 = arith.constant dense<0.000000e+00> : vector<4xf32>
      %18 = vector.multi_reduction <add>, %17, %cst_12 [1] : vector<4x256xf32> to vector<4xf32>
      %19 = vector.shape_cast %18 : vector<4xf32> to vector<4x1xf32>
      %c0_13 = arith.constant 0 : index
      %c0_14 = arith.constant 0 : index
      %20 = vector.load %arg5[%c0_13, %c0_14] : memref<16x4xf32, #tpu.memory_space<vmem>>, vector<16x4xf32>
      %cst_15 = arith.constant dense<0.000000e+00> : vector<16x1xf32>
      %21 = tpu.matmul %20, %19, %cst_15 {dimension_numbers = #tpu.dot_dimension_numbers<[1], [0], [0], [1], [0, 0, 1, 1], [], []>} : vector<16x4xf32>, vector<4x1xf32>, vector<16x1xf32> -> vector<16x1xf32>
      %cst_16 = arith.constant 3.906250e-03 : f32
      %22 = vector.broadcast %cst_16 : f32 to vector<16x1xf32>
      %23 = arith.mulf %21, %22 : vector<16x1xf32>
      %c0_17 = arith.constant 0 : index
      %c0_18 = arith.constant 0 : index
      %24 = vector.load %arg6[%c0_17, %c0_18] : memref<16x1xf32, #tpu.memory_space<vmem>>, vector<16x1xf32>
      %25 = arith.addf %23, %24 : vector<16x1xf32>
      %26 = arith.negf %25 : vector<16x1xf32>
      %27 = math.exp %26 : vector<16x1xf32>
      %cst_19 = arith.constant 1.000000e+00 : f32
      %28 = vector.broadcast %cst_19 : f32 to vector<16x1xf32>
      %29 = arith.addf %28, %27 : vector<16x1xf32>
      %30 = arith.divf %28, %29 : vector<16x1xf32>
      %c0_20 = arith.constant 0 : index
      %c0_21 = arith.constant 0 : index
      %31 = vector.load %arg3[%c0_20, %c0_21] : memref<16x4xf32, #tpu.memory_space<vmem>>, vector<16x4xf32>
      %32 = vector.broadcast %30 : vector<16x1xf32> to vector<16x4xf32>
      %33 = arith.mulf %31, %32 : vector<16x4xf32>
      %c0_22 = arith.constant 0 : index
      %c0_23 = arith.constant 0 : index
      %34 = vector.load %arg8[%c0_22, %c0_23] : memref<16x4xf32, #tpu.memory_space<vmem>>, vector<16x4xf32>
      tpu.vector_store %arg8[%c0_22, %c0_23], %33 {strides = array<i32>} : memref<16x4xf32, #tpu.memory_space<vmem>>, vector<16x4xf32>,
      %c0_24 = arith.constant 0 : index
      %c0_25 = arith.constant 0 : index
      %35 = vector.load %arg4[%c0_24, %c0_25] : memref<16x1xf32, #tpu.memory_space<vmem>>, vector<16x1xf32>
      %36 = arith.mulf %35, %30 : vector<16x1xf32>
      %c0_26 = arith.constant 0 : index
      %c0_27 = arith.constant 0 : index
      %37 = vector.load %arg9[%c0_26, %c0_27] : memref<16x1xf32, #tpu.memory_space<vmem>>, vector<16x1xf32>
      tpu.vector_store %arg9[%c0_26, %c0_27], %36 {strides = array<i32>} : memref<16x1xf32, #tpu.memory_space<vmem>>, vector<16x1xf32>,
    } else {
    }
    %c128_i32 = arith.constant 128 : i32
    %3 = arith.muli %arg1, %c128_i32 : i32
    %4 = tpu.assume_multiple %3, 128 : i32
    %c0 = arith.constant 0 : index
    %c0_1 = arith.constant 0 : index
    %5 = arith.index_cast %4 : i32 to index
    %6 = vector.load %arg2[%c0, %c0_1, %5] : memref<1x4x256xf32, #tpu.memory_space<vmem>>, vector<1x4x128xf32>
    %7 = vector.shape_cast %6 : vector<1x4x128xf32> to vector<4x128xf32>
    %c0_2 = arith.constant 0 : index
    %c0_3 = arith.constant 0 : index
    %8 = vector.load %arg8[%c0_2, %c0_3] : memref<16x4xf32, #tpu.memory_space<vmem>>, vector<16x4xf32>
    %cst = arith.constant dense<0.000000e+00> : vector<16x128xf32>
    %9 = tpu.matmul %8, %7, %cst {dimension_numbers = #tpu.dot_dimension_numbers<[1], [0], [0], [1], [0, 0, 1, 1], [], []>} : vector<16x4xf32>, vector<4x128xf32>, vector<16x128xf32> -> vector<16x128xf32>
    %c0_4 = arith.constant 0 : index
    %c0_5 = arith.constant 0 : index
    %10 = vector.load %arg9[%c0_4, %c0_5] : memref<16x1xf32, #tpu.memory_space<vmem>>, vector<16x1xf32>
    %11 = vector.broadcast %10 : vector<16x1xf32> to vector<16x128xf32>
    %12 = arith.addf %9, %11 : vector<16x128xf32>
    %c0_6 = arith.constant 0 : index
    %c0_7 = arith.constant 0 : index
    %c0_8 = arith.constant 0 : index
    %13 = vector.load %arg7[%c0_6, %c0_7, %c0_8] : memref<1x16x128xf32, #tpu.memory_space<vmem>>, vector<1x16x128xf32>
    %14 = vector.shape_cast %13 : vector<1x16x128xf32> to vector<16x128xf32>
    %15 = vector.shape_cast %12 : vector<16x128xf32> to vector<1x16x128xf32>
    tpu.vector_store %arg7[%c0_6, %c0_7, %c0_8], %15 {strides = array<i32>} : memref<1x16x128xf32, #tpu.memory_space<vmem>>, vector<1x16x128xf32>,
    return
  }
  func.func @transform_0(%arg0: i32, %arg1: i32) -> (i32, i32, i32) {
    %c0_i32 = arith.constant 0 : i32
    %c0_i32_0 = arith.constant 0 : i32
    %c0_i32_1 = arith.constant 0 : i32
    return %arg0, %c0_i32, %c0_i32_0 : i32, i32, i32
  }
  func.func @transform_1(%arg0: i32, %arg1: i32) -> (i32, i32) {
    %c0_i32 = arith.constant 0 : i32
    %c0_i32_0 = arith.constant 0 : i32
    %c0_i32_1 = arith.constant 0 : i32
    return %c0_i32, %c0_i32_0 : i32, i32
  }
  func.func @transform_2(%arg0: i32, %arg1: i32) -> (i32, i32) {
    %c0_i32 = arith.constant 0 : i32
    %c0_i32_0 = arith.constant 0 : i32
    %c0_i32_1 = arith.constant 0 : i32
    return %c0_i32, %c0_i32_0 : i32, i32
  }
  func.func @transform_3(%arg0: i32, %arg1: i32) -> (i32, i32) {
    %c0_i32 = arith.constant 0 : i32
    %c0_i32_0 = arith.constant 0 : i32
    %c0_i32_1 = arith.constant 0 : i32
    return %c0_i32, %c0_i32_0 : i32, i32
  }
  func.func @transform_4(%arg0: i32, %arg1: i32) -> (i32, i32) {
    %c0_i32 = arith.constant 0 : i32
    %c0_i32_0 = arith.constant 0 : i32
    %c0_i32_1 = arith.constant 0 : i32
    return %c0_i32, %c0_i32_0 : i32, i32
  }
  func.func @transform_5(%arg0: i32, %arg1: i32) -> (i32, i32, i32) {
    %c0_i32 = arith.constant 0 : i32
    %c0_i32_0 = arith.constant 0 : i32
    return %arg0, %c0_i32, %arg1 : i32, i32, i32
  }
}

</mosaic_0001>

<bundles_post_ra>
// kernel: tpu_custom_call.1
= control target key start
LH: loop header
LB: loop body
LE: loop exit
PB: predicated region body
PF: predicated region fallthrough
CT: control target
= control target key end

     0   :  { %10 = vsyncpa [#allocation5], 0  ;;  %s914_s0 = inlined_call_operand.vmem [shape: f32[2,4,256], index: 0, kind: input, shape index: {}]   ;;  %s915_s1 = inlined_call_operand.vmem [shape: f32[16,4], index: 1, kind: input, shape index: {}]   ;;  %s916_s2 = inlined_call_operand.vmem [shape: f32[16,1], index: 2, kind: input, shape index: {}]   ;;  %s917_s3 = inlined_call_operand.vmem [shape: f32[16,4], index: 3, kind: input, shape index: {}]   ;;  %s918_s4 = inlined_call_operand.vmem [shape: f32[16,1], index: 4, kind: input, shape index: {}]   ;;  %s919_s5 = inlined_call_operand.hbm [shape: f32[2,16,256], index: 5, kind: output, shape index: {}]  }
   0x1   :  { %12 = vsyncpa [#allocation5 + $0x1], 0  ;;  %s751_s18 = smov 0   ;;  %s753_s19 = smov 0  }
   0x2   :  { %s755_s20 = smov 0   ;;  %s757_s21 = smov 0  }
   0x3   :  { %s759_s22 = smov 0   ;;  %s761_s23 = smov 0  }
   0x4   :  { %s763_s24 = smov 0   ;;  %s765_s25 = smov 0  }
   0x5 LB: > { %s506_s26 = sadd.s32 4294967295, %s714_s25   ;;  %s507_s27 = sadd.s32 4294967294, %s714_s25   ;;  %s714_s25 = sphi %s765_s25, %s18_s25   ;;  %s710_s24 = sphi %s763_s24, %s928_s24   ;;  %s706_s23 = sphi %s761_s23, %s927_s23   ;;  %s702_s22 = sphi %s759_s22, %s926_s22   ;;  %s698_s21 = sphi %s757_s21, %s925_s21   ;;  %s694_s20 = sphi %s755_s20, %s924_s20   ;;  %s690_s19 = sphi %s753_s19, %s923_s19   ;;  %s686_s18 = sphi %s751_s18, %s922_s18  }
   0x6   : > { %s27_s28 = sadd.s32 1, %s706_s23  ;;  %s30_s29 = sadd.s32 1, %s710_s24 }
   0x7   : > { %p28_p0 = scmp.ge.s32.totalorder %s27_s28, 2  ;;  %p159_p1 = scmp.ne.s32.totalorder %s694_s20, %s690_s19 }
   0x8   : > { %p160_p2 = scmp.eq.s32.totalorder %s506_s26, 3  ;;  %p165_p5 = scmp.ne.s32.totalorder %s690_s19, %s686_s18 }
   0x9   : > { %s930_s28 = smov (%p28_p0, %s27_s28), 0  ;;  %s932_s29 = smov (!%p28_p0, %s30_s29), %s710_s24 }
   0xa   : > { %s145_s30 = ssub.s32 %s706_s23, %s930_s28  ;;  %p802_p3 = por %p160_p2, %p159_p1 }
   0xb   : > { %p32_p4 = scmp.ge.s32.totalorder %s932_s29, 2  ;;  %p166_p6 = scmp.eq.s32.totalorder %s507_s27, 3 }
   0xc   : > { %p510_p7 = scmp.ge.s32.totalorder %s714_s25, 1  ;;  %p204_p9 = scmp.lt.s32.totalorder %s714_s25, 5 }
   0xd   : > { %s934_s29 = smov (%p32_p4, %s932_s29), 0  ;;  %p811_p8 = por %p166_p6, %p165_p5 }
   0xe   : > { %s144_s8 = ssub.s32 %s710_s24, %s934_s29  ;;  %s149_s9 = sadd.s32 1, %s694_s20 }
   0xf   : > { %s146_s10 = sor.u32 %s145_s30, %s144_s8  ;;  %p205_p10 = pnand %p510_p7, %p204_p9 }
  0x10   : > { %p147_p11 = scmp.eq.s32.totalorder %s146_s10, 0  ;;  %s229_s12 = sand.u32 (!%p205_p10), 1, %s690_s19  }
  0x11   : > { %208 = sbr.rel (%p205_p10) target bundleno = 574 (0x23e), region = 40  ;;  %p232_p12 = scmp.lt.s32.totalorder (!%p205_p10), %s702_s22, 1 }
  0x12   : > { %s820_s11 = scalar_select %p147_p11, %s694_s20, %s149_s9  }
  0x13   : > { %s511_s13 = sshll.u32 (!%p205_p10), %s229_s12, 4  ;;  %p514_p13 = scmp.ne.s32.totalorder (!%p205_p10), %s698_s21, 0 }
  0x14   : > { %s832_s27 = scalar_lea.vmem (!%p205_p10), [#allocation4], %s511_s13 }
  0x16   : > { %s233_s14 = scalar_select %p232_p12, %s702_s22, 1 }
  0x17   : > { %240 = sbr.rel (%p514_p13) target bundleno = 434 (0x1b2), region = 44 }
  0x18   : > { %s530_s15 = sshll.u32 %s233_s14, 3 }
  0x19   : > { %s830_s26 = scalar_lea.vmem %s914_s0, %s530_s15 }
  0x1c   : > { %v241_v0 = vld [vmem:[%s830_s26] sm:$0xff]  ;;  %vm248_vm0 = vcmask 1043456   ;;  %vm256_vm1 = vcmask 31744   ;;  %v255_v7 = vld [vmem:[%s917_s3 + $0x8] sm:$0xff]  ;;  %v716_v9 = vmov 0   ;;  %vm353_vm10 = vcmask 7168  }
  0x1d   : > { %243 = vst [vmem:[#allocation1] ss:$2 sm:$0xff] %v241_v0  ;;  %v254_v6 = vld [vmem:[%s917_s3] sm:$0xff]  ;;  %610 = vset.pattern.permute.xlu1 %v716_v9  ;;  %609 = vset.pattern.permute.xlu0 %v716_v9  ;;  %v292_v13 = vld [vmem:[%s918_s4 + $0x8] sm:$0xff] }
  0x1e   : > { %v291_v11 = vld [vmem:[%s918_s4] sm:$0xff]  ;;  %v350_v41 = vld [vmem:[%s916_s2 + $0x8] sm:$0xff] }
  0x1f   : > { %v349_v39 = vld [vmem:[%s916_s2] sm:$0xff]  ;;  %v334_v49 = vld [vmem:[%s915_s1 + $0x8] sm:$0xff] }
  0x20   : > { %v333_v48 = vld [vmem:[%s915_s1] sm:$0xff] }
  0x24   : > { %v244_v1 = vld.sshfl [vmem:[#allocation1] sm:$0xff pattern:$0x75316420]  ;;  %v245_v2 = vld.sshfl [vmem:[#allocation1 + $0x8] sm:$0xff pattern:$0x75316420] }
  0x25   : > { %v249_v3 = vsel %vm248_vm0, %v244_v1, 0.0  ;;  %v250_v4 = vsel %vm248_vm0, %v245_v2, 0.0 }
  0x26   : > { %v251_v5 = vadd.f32 %v250_v4, %v249_v3 }
  0x28   : > { %252 = vadd.xlane.f32.xlu0 %v251_v5 }
  0x9b   : > { %v253_v8 = vpop.xlane.xlu0 %252 }
  0x9c   : > { %515 = vmatpush.msk.msra.mxu0 %vm248_vm0, %v253_v8  ;;  %531 = vmatpush.msk.msra.mxu1 %vm248_vm0, %v253_v8 }
  0x9d   : > { %516 = vmatmul.msk.f32.vlgmr.msra.gmra.mxu0 %vm256_vm1, %v254_v6  ;;  %517 = vmatmul.msk.f32.vlgmr.msra.gmra.mxu1 %vm256_vm1, %v255_v7 }
 0x11a   : > { %v283_v10 = vpop.f32.mrf.mxu0  ;;  %v286_v12 = vpop.f32.mrf.mxu1 }
 0x11b   : > { %v289_v14 = vmul.f32 0.00390625, %v283_v10  ;;  %v290_v15 = vmul.f32 0.00390625, %v286_v12 }
 0x11d   : > { %v293_v16 = vadd.f32 %v291_v11, %v289_v14  ;;  %v294_v17 = vadd.f32 %v292_v13, %v290_v15 }
 0x11f   : > { %v518_v18 = vmul.f32 -1.442695, %v293_v16  ;;  %v519_v19 = vmul.f32 -1.442695, %v294_v17 }
 0x121   : > { %611 = vpow2.f32 %v518_v18 }
 0x122   : > { %613 = vpow2.f32 %v519_v19 }
 0x127   : > { %v612_v20 = vpop.eup %611 }
 0x128   : > { %v614_v21 = vpop.eup %613  ;;  %v301_v22 = vadd.f32 1.0, %v612_v20 }
 0x129   : > { %v302_v23 = vadd.f32 1.0, %v614_v21 }
 0x12a   : > { %615 = vrcp.f32 %v301_v22  ;;  %v314_v30 = vand.u32 2147483648, %v301_v22  ;;  %v312_v33 = vand.u32 2147483647, %v301_v22  ;;  %vm308_vm4 = vweird.f32 %v301_v22 }
 0x12b   : > { %617 = vrcp.f32 %v302_v23  ;;  %v329_v31 = vand.u32 2147483648, %v302_v23  ;;  %v327_v35 = vand.u32 2147483647, %v302_v23  ;;  %vm323_vm5 = vweird.f32 %v302_v23 }
 0x12c   : > { %v315_v38 = vor.u32 1.1754944e-38, %v314_v30  ;;  %vm313_vm8 = vcmp.eq.f32.partialorder %v312_v33, 8.507059e+37 }
 0x12d   : > { %v330_v40 = vor.u32 1.1754944e-38, %v329_v31  ;;  %vm328_vm9 = vcmp.eq.f32.partialorder %v327_v35, 8.507059e+37 }
 0x130   : > { %v616_v24 = vpop.eup %615 }
 0x131   : > { %v618_v25 = vpop.eup %617  ;;  %v304_v26 = vmul.f32 %v616_v24, %v301_v22  ;;  %vm309_vm2 = vweird.f32 %v616_v24 }
 0x132   : > { %v319_v27 = vmul.f32 %v618_v25, %v302_v23  ;;  %vm324_vm3 = vweird.f32 %v618_v25  ;;  %vm310_vm6 = vmor %vm308_vm4, %vm309_vm2 }
 0x133   : > { %v305_v28 = vsub.f32 1.0, %v304_v26  ;;  %vm325_vm7 = vmor %vm323_vm5, %vm324_vm3 }
 0x134   : > { %v320_v29 = vsub.f32 1.0, %v319_v27 }
 0x135   : > { %v306_v32 = vmul.f32 %v616_v24, %v305_v28 }
 0x136   : > { %v321_v34 = vmul.f32 %v618_v25, %v320_v29 }
 0x137   : > { %v307_v36 = vadd.f32 %v616_v24, %v306_v32 }
 0x138   : > { %v322_v37 = vadd.f32 %v618_v25, %v321_v34 }
 0x139   : > { %v311_v42 = vsel %vm310_vm6, %v616_v24, %v307_v36 }
 0x13a   : > { %v326_v43 = vsel %vm325_vm7, %v618_v25, %v322_v37  ;;  %v316_v44 = vsel %vm313_vm8, %v315_v38, %v311_v42 }
 0x13b   : > { %v331_v45 = vsel %vm328_vm9, %v330_v40, %v326_v43  ;;  %337 = vperm.xlu0 %609, %v316_v44   ;;  %v351_v46 = vmul.f32 %v349_v39, %v316_v44 }
 0x13c   : > { %342 = vperm.xlu1 %610, %v331_v45   ;;  %v352_v47 = vmul.f32 %v350_v41, %v331_v45 }
 0x13d   : > { %354 = vst.msk [vmem:[#allocation3] sm:$0xff] %vm353_vm10, %v351_v46 }
 0x13e   : > { %355 = vst.msk [vmem:[#allocation3 + $0x8] sm:$0xff] %vm353_vm10, %v352_v47 }
 0x1ad   : > { %v338_v50 = vpop.permute.xlu0 %337 }
 0x1ae   : > { %v343_v51 = vpop.permute.xlu1 %342  ;;  %v345_v52 = vmul.f32 %v338_v50, %v333_v48 }
 0x1af   : > { %v346_v53 = vmul.f32 %v343_v51, %v334_v49 }
 0x1b0   : > { %347 = vst.msk [vmem:[#allocation2] sm:$0xff] %vm256_vm1, %v345_v52 }
 0x1b1   : > { %348 = vst.msk [vmem:[#allocation2 + $0x8] sm:$0xff] %vm256_vm1, %v346_v53 }
 0x1b2 PF: > { %v364_v54 = vld [vmem:[#allocation3] sm:$0xff]  ;;  %s520_s16 = sshll.u32 %s698_s21, 7  ;;  %v717_v55 = vmov 0   ;;  %vm383_vm11 = vcmask 1043456   ;;  %vm376_vm12 = vcmask 31744   ;;  %v365_v59 = vld [vmem:[#allocation3 + $0x8] sm:$0xff] }
 0x1b3   : > { %619 = vset.pattern.permute.xlu0 %v717_v55  ;;  %s357_s17 = sshra.s32 %s520_s16, 7  ;;  %s526_s9 = sshll.u32 %s702_s22, 2 }
 0x1b4   : > { %368 = vperm.xlu0 %619, %v364_v54   ;;  %s521_s30 = sshll.u32 %s357_s17, 2  ;;  %s423_s10 = sadd.s32 %s698_s21, %s526_s9 }
 0x1b5   : > { %s360_s8 = scalar_lea.vmem %s830_s26, %s521_s30  ;;  %s527_s13 = sshll.u32 %s423_s10, 3 }
 0x1b6   : > { %v361_v58 = vld [vmem:[%s360_s8] sm:$0xf]  ;;  %s425_s15 = scalar_lea.hbm %s919_s5, %s527_s13  ;;  %s426_s16 = sshll.u32 %s832_s27, 4  ;;  %s427_s16 = int_to_ptr.vmem [resolvable:$true] %s426_s16 }
 0x1b7   : > { %v362_v56 = vld [vmem:[#allocation2] sm:$0xff]  ;;  %522 = vmatpush.msk.msra.mxu0 %vm383_vm11, %v361_v58  ;;  %532 = vmatpush.msk.msra.mxu1 %vm383_vm11, %v361_v58  ;;  %s428_s17 = sshll.u32 %s425_s15, 4  ;;  %s413_s22 = scalar_lea.sflag [#allocation5], %s229_s12  ;;  %s429_s17 = int_to_ptr.hbm [resolvable:$true] %s428_s17 }
 0x1b8   : > { %v363_v57 = vld [vmem:[#allocation2 + $0x8] sm:$0xff]  ;;  %523 = vmatmul.msk.f32.vlgmr.msra.gmra.mxu0 %vm376_vm12, %v362_v56  ;;  %s634_s21 = sshra.s32 %s429_s17, 4  ;;  %s640_s10 = scalar_lea.hbm %s919_s5, 64  ;;  %s635_s21 = int_to_ptr.hbm [resolvable:$true] %s634_s21 }
 0x1b9   : > { %524 = vmatmul.msk.f32.vlgmr.msra.gmra.mxu1 %vm376_vm12, %v363_v57  ;;  %s636_s30 = scalar_lea.hbm %s635_s21, 16  ;;  %p641_p4 = scmp.lt.s32.totalorder %s635_s21, %s919_s5 }
 0x1ba   : > { %p637_p0 = scmp.ne.s32.totalorder %s635_s21, %s636_s30  ;;  %p642_p5 = scmp.lt.s32.totalorder %s640_s10, %s636_s30 }
 0x1bc   : > { %373 = vperm.xlu0 %619, %v365_v59   ;;  %p638_p1 = pnand %p637_p0, %p802_p3  ;;  %p643_p6 = por %p642_p5, %p641_p4 }
 0x1be   : > { %p639_p2 = pneg %p638_p1 }
 0x1c0   : > { %p644_p7 = pnand %p643_p6, %p639_p2 }
 0x226   : > { %v369_v60 = vpop.permute.xlu0 %368 }
 0x22e   : > { %v374_v61 = vpop.permute.xlu0 %373 }
 0x235   : > { %v404_v62 = vpop.f32.mrf.mxu0 }
 0x236   : > { %v407_v63 = vpop.f32.mrf.mxu1  ;;  %v405_v0 = vadd.f32 %v404_v62, %v369_v60 }
 0x237   : > { %v408_v1 = vadd.f32 %v407_v63, %v374_v61 }
 0x238   : > { %410 = vst [vmem:[%s832_s27] sm:$0xff] %v405_v0 }
 0x239   : > { %411 = vst [vmem:[%s832_s27 + $0x8] sm:$0xff] %v408_v1 }
 0x23a   : > { %647 = shalt.err (!%p644_p7)
}
 0x23b   : > { %s718_s12 = smov 128   ;;  %s719_s27 = smov 256  }
 0x23c   : > { %s720_s26 = smov 8  }
 0x23d   : > { %533 = dma.vmem_to_hbm [thread:$0]  (%p802_p3), %s427_s16, 256, %s429_s17, %s413_s22, %s718_s12, %s719_s27, %s720_s26  }
 0x23e PF: > { %p539_p9 = scmp.ge.s32.totalorder %s714_s25, 2  ;;  %s443_s15 = sand.u32 1, %s686_s18  }
 0x23f   : > { %s444_s21 = scalar_lea.sflag [#allocation5], %s443_s15 }
 0x240   : > { %p536_p10 = pnand %p539_p9, %p811_p8 }
 0x242   : > { %p537_p11 = pneg %p536_p10 }
 0x244   : > { %681 = dma.done.wait (%p537_p11), %s444_s21, 256  }
 0x245   : > { %683 = vsyncadd (%p537_p11), %s444_s21, 4294967040  ;;  %s18_s25 = sadd.s32 1, %s714_s25   ;;  %s922_s18 = smov %s690_s19 }
 0x246   : > { %p15_p12 = scmp.ge.s32.totalorder %s18_s25, 6   ;;  %s923_s19 = smov %s694_s20 }
 0x247   : > { %s924_s20 = smov %s820_s11  ;;  %s925_s21 = smov %s706_s23 }
 0x248   : > { %s926_s22 = smov %s710_s24  ;;  %s927_s23 = smov %s930_s28 }
 0x249   : > { %s928_s24 = smov %s934_s29  ;;  %17 = sbr.rel (!%p15_p12) target bundleno = 5 (0x5), region = 80 }
 0x24e   :  { %450 = vsyncpa [#allocation5], 1 }
 0x24f   :  { %452 = vsyncpa [#allocation5 + $0x1], 1 }

</bundles_post_ra>
